<compile_context>
chip_gen: v6e
topology: v6e:2x2x1
jax: 0.10.0
libtpu: 0.0.40
codegen_flags: <defaults>
</compile_context>

<pallas_src>
import jax
import jax.numpy as jnp
from jax.experimental import pallas as pl
from jax.experimental.pallas import tpu as pltpu


def _critic_kernel(x_ref, w1_ref, b1_ref, w2_ref, b2_ref, w3_ref, b3_ref, o_ref):
    """Fused 3-layer MLP: tanh(xW1+b1) -> tanh(.W2+b2) -> .w3 + b3 (identity head)."""
    # bf16 operands for the MXU (no-op cast if obs already arrives in bf16),
    # f32 accumulation; bias add + tanh stay f32 (portable to v5e).
    x = x_ref[...].astype(jnp.bfloat16)
    h1 = jnp.tanh(
        jnp.dot(x, w1_ref[...], preferred_element_type=jnp.float32) + b1_ref[...]
    )
    h2 = jnp.tanh(
        jnp.dot(h1.astype(jnp.bfloat16), w2_ref[...],
                preferred_element_type=jnp.float32) + b2_ref[...]
    )
    # Value head (out_features == 1): contract w3 (1, h2) against h2 (tb, h2)
    # over the feature axis (same transposed-rhs pattern as flash attention's
    # QK^T), producing a lane-dense (1, tb) row -> dense output store instead
    # of a masked (tb, 1) one-lane store. Kept in f32 (tiny).
    v = jax.lax.dot_general(
        w3_ref[...], h2,
        dimension_numbers=(((1,), (1,)), ((), ())),
        preferred_element_type=jnp.float32,
    ) + b3_ref[...]                      # (1, tb) + (1, 1) broadcast
    o_ref[...] = v.reshape(o_ref.shape).astype(o_ref.dtype)


def _pick_batch_tile(batch, obs_dim, requested=None):
    """Choose a batch tile: prefer multiples of 128 (lane-dense head stores),
    fall back to multiples of 8; VMEM-bounded; >= 2 grid steps when possible."""
    if requested is not None:
        tb = int(requested)
        assert batch % tb == 0, "batch must be divisible by batch_tile"
        assert tb == batch or tb % 8 == 0, "batch_tile must be a multiple of 8"
        return tb
    # Keep one obs tile <= ~4 MiB so 2x-buffered inputs + resident weights stay
    # well inside scoped VMEM on every generation (v5e 16 MiB default scoped,
    # v7x 64 MiB physical), while still large enough to amortize the ~0.35 us
    # per-grid-step overhead.
    bytes_per_row = max(1, obs_dim) * 4
    cap_rows = max(8, min(2048, (4 * 1024 * 1024) // bytes_per_row))
    cap_rows -= cap_rows % 8
    if batch % 8 != 0:
        # Single full block is always legal (block dim == full array dim).
        return batch

    def _largest_divisor(step):
        top = min(batch, cap_rows)
        top -= top % step
        for cand in range(top, 0, -step):
            if batch % cand == 0:
                return cand
        return None

    tb = None
    if batch % 128 == 0:
        tb = _largest_divisor(128)      # unmasked 128-lane output stores
    if tb is None:
        tb = _largest_divisor(8)
    if tb is None:
        tb = batch
    if tb == batch and batch >= 16 and (batch // 2) % 8 == 0:
        # Force >= 2 grid steps so v7x's two TensorCores both get work and the
        # obs-tile DMA pipelines against compute.
        tb = batch // 2
    return tb


def mlp_critic_forward(obs, params, *, batch_tile=None):
    """Run the critic. obs: [B, obs_dim] (f32 or bf16). Returns values of shape [B]."""
    (w1, b1), (w2, b2), (w3, b3) = params
    B, obs_dim = obs.shape
    h1 = w1.shape[1]
    h2 = w2.shape[1]

    tb = _pick_batch_tile(B, obs_dim, batch_tile)
    n_tiles = B // tb

    # Tiny static weights go to bf16 for the MXU; biases + value head stay f32.
    w1_bf = w1.astype(jnp.bfloat16)
    w2_bf = w2.astype(jnp.bfloat16)
    w3_row = w3.reshape(1, h2).astype(jnp.float32)   # (h2, 1) -> (1, h2)
    b3_sc = b3.reshape(1, 1).astype(jnp.float32)

    cost = pl.CostEstimate(
        flops=2 * B * (obs_dim * h1 + h1 * h2 + h2),
        transcendentals=B * (h1 + h2),
        bytes_accessed=int(obs.size * obs.dtype.itemsize
                           + 2 * (w1_bf.size + w2_bf.size)
                           + 4 * (b1.size + b2.size + w3_row.size + b3_sc.size)
                           + 4 * B),
    )

    out = pl.pallas_call(
        _critic_kernel,
        out_shape=jax.ShapeDtypeStruct((n_tiles, 1, tb), jnp.float32),
        grid_spec=pltpu.PrefetchScalarGridSpec(
            num_scalar_prefetch=0,
            grid=(n_tiles,),
            in_specs=[
                pl.BlockSpec((tb, obs_dim), lambda i: (i, 0)),   # obs tile (pipelined)
                pl.BlockSpec((obs_dim, h1), lambda i: (0, 0)),   # W1 (resident, bf16)
                pl.BlockSpec((1, h1), lambda i: (0, 0)),         # b1
                pl.BlockSpec((h1, h2), lambda i: (0, 0)),        # W2 (resident, bf16)
                pl.BlockSpec((1, h2), lambda i: (0, 0)),         # b2
                pl.BlockSpec((1, h2), lambda i: (0, 0)),         # w3 row (value head)
                pl.BlockSpec((1, 1), lambda i: (0, 0)),          # b3
            ],
            # Block last dim == full array last dim -> legal for any tb; tb a
            # multiple of 128 gives fully unmasked lane-dense stores.
            out_specs=pl.BlockSpec((1, 1, tb), lambda i: (i, 0, 0)),
        ),
        compiler_params=pltpu.CompilerParams(
            dimension_semantics=("parallel",),
            vmem_limit_bytes=32 * 1024 * 1024,
        ),
        cost_estimate=cost,
    )(obs, w1_bf, b1, w2_bf, b2, w3_row, b3_sc)

    # torch.squeeze(v_net(obs), -1)
    return out.reshape(B)


def init_critic_params(key, obs_dim, hidden_sizes):
    """Deterministic parameter init (uniform, PyTorch-Linear-like fan_in scaling).

    Weights stored as [in, out]; biases as [1, out] for in-kernel broadcast."""
    sizes = [obs_dim] + list(hidden_sizes) + [1]
    params = []
    for i in range(len(sizes) - 1):
        fan_in, fan_out = sizes[i], sizes[i + 1]
        key, kw, kb = jax.random.split(key, 3)
        bound = 1.0 / (fan_in ** 0.5)
        w = jax.random.uniform(kw, (fan_in, fan_out), jnp.float32, -bound, bound)
        b = jax.random.uniform(kb, (1, fan_out), jnp.float32, -bound, bound)
        params.append((w, b))
    return params


def _reference_forward_f32(obs, params):
    (w1, b1), (w2, b2), (w3, b3) = params
    h = jnp.tanh(obs @ w1 + b1)
    h = jnp.tanh(h @ w2 + b2)
    return jnp.squeeze(h @ w3 + b3, -1)


def _reference_forward_bf16_matched(obs, params):
    """Reference that mirrors the kernel's bf16-operand / f32-accumulate matmuls."""
    (w1, b1), (w2, b2), (w3, b3) = params
    h = jnp.tanh(jnp.dot(obs.astype(jnp.bfloat16), w1.astype(jnp.bfloat16),
                         preferred_element_type=jnp.float32) + b1)
    h = jnp.tanh(jnp.dot(h.astype(jnp.bfloat16), w2.astype(jnp.bfloat16),
                         preferred_element_type=jnp.float32) + b2)
    return jnp.squeeze(h @ w3 + b3, -1)


if __name__ == "__main__":
    key = jax.random.PRNGKey(0)
    batch, obs_dim = 64, 16
    hidden_sizes = [32, 32]          # tanh on hidden layers, identity output head

    key, kobs = jax.random.split(key)
    obs = jax.random.normal(kobs, (batch, obs_dim), jnp.float32)
    params = init_critic_params(key, obs_dim, hidden_sizes)

    v = mlp_critic_forward(obs, params)
    v = jax.block_until_ready(v)
    assert v.shape == (batch,)

    v_match = _reference_forward_bf16_matched(obs, params)
    v_f32 = _reference_forward_f32(obs, params)
    assert jnp.allclose(v, v_match, atol=1e-3, rtol=1e-3), "mismatch vs bf16-matched reference"
    assert jnp.allclose(v, v_f32, atol=5e-2, rtol=5e-2), "mismatch vs f32 reference"

    # TODO(synk): dataparallel() (nn.DataParallel) is multi-device orchestration;
    # handle it outside the kernel (e.g. shard_map over the batch axis).
    print("KERNEL_OK")
</pallas_src>

<mosaic_0001>
module attributes {stable_mosaic.version = 11 : i64} {
  func.func @_critic_kernel(%arg0: i32, %arg1: memref<32x16xf32, #tpu.memory_space<vmem>>, %arg2: memref<16x32xbf16, #tpu.memory_space<vmem>>, %arg3: memref<1x32xf32, #tpu.memory_space<vmem>>, %arg4: memref<32x32xbf16, #tpu.memory_space<vmem>>, %arg5: memref<1x32xf32, #tpu.memory_space<vmem>>, %arg6: memref<1x32xf32, #tpu.memory_space<vmem>>, %arg7: memref<1x1xf32, #tpu.memory_space<vmem>>, %arg8: memref<1x1x32xf32, #tpu.memory_space<vmem>>) attributes {dimension_semantics = [#tpu.dimension_semantics<parallel>], iteration_bounds = array<i64: 2>, scalar_prefetch = 0 : i64, scratch_operands = 0 : i64, tpu.core_type = #tpu.core_type<tc>, window_params = [{transform_indices = @transform_0, window_bounds = array<i64: 32, 16>}, {pipeline_mode = #tpu.pipeline_mode<synchronous>, transform_indices = @transform_1, window_bounds = array<i64: 16, 32>}, {pipeline_mode = #tpu.pipeline_mode<synchronous>, transform_indices = @transform_2, window_bounds = array<i64: 1, 32>}, {pipeline_mode = #tpu.pipeline_mode<synchronous>, transform_indices = @transform_3, window_bounds = array<i64: 32, 32>}, {pipeline_mode = #tpu.pipeline_mode<synchronous>, transform_indices = @transform_4, window_bounds = array<i64: 1, 32>}, {pipeline_mode = #tpu.pipeline_mode<synchronous>, transform_indices = @transform_5, window_bounds = array<i64: 1, 32>}, {pipeline_mode = #tpu.pipeline_mode<synchronous>, transform_indices = @transform_6, window_bounds = array<i64: 1, 1>}, {transform_indices = @transform_7, window_bounds = array<i64: 1, 1, 32>}]} {
    %c0 = arith.constant 0 : index
    %c0_0 = arith.constant 0 : index
    %0 = vector.load %arg1[%c0, %c0_0] : memref<32x16xf32, #tpu.memory_space<vmem>>, vector<32x16xf32>
    %1 = arith.truncf %0 : vector<32x16xf32> to vector<32x16xbf16>
    %c0_1 = arith.constant 0 : index
    %c0_2 = arith.constant 0 : index
    %2 = vector.load %arg2[%c0_1, %c0_2] : memref<16x32xbf16, #tpu.memory_space<vmem>>, vector<16x32xbf16>
    %cst = arith.constant dense<0.000000e+00> : vector<32x32xf32>
    %3 = tpu.matmul %1, %2, %cst {dimension_numbers = #tpu.dot_dimension_numbers<[1], [0], [0], [1], [0, 0, 1, 1], [], []>} : vector<32x16xbf16>, vector<16x32xbf16>, vector<32x32xf32> -> vector<32x32xf32>
    %c0_3 = arith.constant 0 : index
    %c0_4 = arith.constant 0 : index
    %4 = vector.load %arg3[%c0_3, %c0_4] : memref<1x32xf32, #tpu.memory_space<vmem>>, vector<1x32xf32>
    %5 = vector.broadcast %4 : vector<1x32xf32> to vector<32x32xf32>
    %6 = arith.addf %3, %5 : vector<32x32xf32>
    %7 = math.tanh %6 : vector<32x32xf32>
    %8 = arith.truncf %7 : vector<32x32xf32> to vector<32x32xbf16>
    %c0_5 = arith.constant 0 : index
    %c0_6 = arith.constant 0 : index
    %9 = vector.load %arg4[%c0_5, %c0_6] : memref<32x32xbf16, #tpu.memory_space<vmem>>, vector<32x32xbf16>
    %cst_7 = arith.constant dense<0.000000e+00> : vector<32x32xf32>
    %10 = tpu.matmul %8, %9, %cst_7 {dimension_numbers = #tpu.dot_dimension_numbers<[1], [0], [0], [1], [0, 0, 1, 1], [], []>} : vector<32x32xbf16>, vector<32x32xbf16>, vector<32x32xf32> -> vector<32x32xf32>
    %c0_8 = arith.constant 0 : index
    %c0_9 = arith.constant 0 : index
    %11 = vector.load %arg5[%c0_8, %c0_9] : memref<1x32xf32, #tpu.memory_space<vmem>>, vector<1x32xf32>
    %12 = vector.broadcast %11 : vector<1x32xf32> to vector<32x32xf32>
    %13 = arith.addf %10, %12 : vector<32x32xf32>
    %14 = math.tanh %13 : vector<32x32xf32>
    %c0_10 = arith.constant 0 : index
    %c0_11 = arith.constant 0 : index
    %15 = vector.load %arg6[%c0_10, %c0_11] : memref<1x32xf32, #tpu.memory_space<vmem>>, vector<1x32xf32>
    %cst_12 = arith.constant dense<0.000000e+00> : vector<1x32xf32>
    %16 = tpu.matmul %15, %14, %cst_12 {dimension_numbers = #tpu.dot_dimension_numbers<[1], [1], [0], [0], [0, 0, 1, 0], [], []>} : vector<1x32xf32>, vector<32x32xf32>, vector<1x32xf32> -> vector<1x32xf32>
    %c0_13 = arith.constant 0 : index
    %c0_14 = arith.constant 0 : index
    %17 = vector.load %arg7[%c0_13, %c0_14] : memref<1x1xf32, #tpu.memory_space<vmem>>, vector<1x1xf32>
    %18 = vector.broadcast %17 : vector<1x1xf32> to vector<1x32xf32>
    %19 = arith.addf %16, %18 : vector<1x32xf32>
    %20 = vector.shape_cast %19 : vector<1x32xf32> to vector<1x1x32xf32>
    %c0_15 = arith.constant 0 : index
    %c0_16 = arith.constant 0 : index
    %c0_17 = arith.constant 0 : index
    %21 = vector.load %arg8[%c0_15, %c0_16, %c0_17] : memref<1x1x32xf32, #tpu.memory_space<vmem>>, vector<1x1x32xf32>
    tpu.vector_store %arg8[%c0_15, %c0_16, %c0_17], %20 {strides = array<i32>} : memref<1x1x32xf32, #tpu.memory_space<vmem>>, vector<1x1x32xf32>,
    return
  }
  func.func @transform_0(%arg0: i32) -> (i32, i32) {
    %c0_i32 = arith.constant 0 : i32
    %c0_i32_0 = arith.constant 0 : i32
    return %arg0, %c0_i32 : i32, i32
  }
  func.func @transform_1(%arg0: i32) -> (i32, i32) {
    %c0_i32 = arith.constant 0 : i32
    %c0_i32_0 = arith.constant 0 : i32
    %c0_i32_1 = arith.constant 0 : i32
    return %c0_i32, %c0_i32_0 : i32, i32
  }
  func.func @transform_2(%arg0: i32) -> (i32, i32) {
    %c0_i32 = arith.constant 0 : i32
    %c0_i32_0 = arith.constant 0 : i32
    %c0_i32_1 = arith.constant 0 : i32
    return %c0_i32, %c0_i32_0 : i32, i32
  }
  func.func @transform_3(%arg0: i32) -> (i32, i32) {
    %c0_i32 = arith.constant 0 : i32
    %c0_i32_0 = arith.constant 0 : i32
    %c0_i32_1 = arith.constant 0 : i32
    return %c0_i32, %c0_i32_0 : i32, i32
  }
  func.func @transform_4(%arg0: i32) -> (i32, i32) {
    %c0_i32 = arith.constant 0 : i32
    %c0_i32_0 = arith.constant 0 : i32
    %c0_i32_1 = arith.constant 0 : i32
    return %c0_i32, %c0_i32_0 : i32, i32
  }
  func.func @transform_5(%arg0: i32) -> (i32, i32) {
    %c0_i32 = arith.constant 0 : i32
    %c0_i32_0 = arith.constant 0 : i32
    %c0_i32_1 = arith.constant 0 : i32
    return %c0_i32, %c0_i32_0 : i32, i32
  }
  func.func @transform_6(%arg0: i32) -> (i32, i32) {
    %c0_i32 = arith.constant 0 : i32
    %c0_i32_0 = arith.constant 0 : i32
    %c0_i32_1 = arith.constant 0 : i32
    return %c0_i32, %c0_i32_0 : i32, i32
  }
  func.func @transform_7(%arg0: i32) -> (i32, i32, i32) {
    %c0_i32 = arith.constant 0 : i32
    %c0_i32_0 = arith.constant 0 : i32
    %c0_i32_1 = arith.constant 0 : i32
    return %arg0, %c0_i32, %c0_i32_0 : i32, i32, i32
  }
}

</mosaic_0001>

<bundles_post_ra>
// kernel: tpu_custom_call.1
= control target key start
LH: loop header
LB: loop body
LE: loop exit
PB: predicated region body
PF: predicated region fallthrough
CT: control target
= control target key end

     0   :  { %s961_s0 = inlined_call_operand.vmem [shape: f32[64,16], index: 0, kind: input, shape index: {}]   ;;  %s962_s1 = inlined_call_operand.vmem [shape: bf16[16,32], index: 1, kind: input, shape index: {}]   ;;  %s963_s2 = inlined_call_operand.vmem [shape: f32[1,32], index: 2, kind: input, shape index: {}]   ;;  %s964_s3 = inlined_call_operand.vmem [shape: bf16[32,32], index: 3, kind: input, shape index: {}]   ;;  %s965_s4 = inlined_call_operand.vmem [shape: f32[1,32], index: 4, kind: input, shape index: {}]   ;;  %s966_s5 = inlined_call_operand.vmem [shape: f32[1,32], index: 5, kind: input, shape index: {}]   ;;  %s967_s6 = inlined_call_operand.<no memory space> [shape: f32[1,1], index: 6, kind: input, shape index: {}]   ;;  %s968_s7 = inlined_call_operand.hbm [shape: f32[2,1,32], index: 7, kind: output, shape index: {}]  }
   0x1   :  { %v12_v0 = vstv %s967_s6 }
   0x2   :  { %13 = vst [vmem:[#allocation2] sm:$0x1] %v12_v0 }
   0x3   :  { %14 = vsyncpa [#allocation4], 0 }
   0x4   :  { %16 = vsyncpa [#allocation4 + $0x1], 0  ;;  %s844_s26 = smov 0   ;;  %s846_s27 = smov 0  }
   0x5   :  { %s848_s28 = smov 0   ;;  %s850_s29 = smov 0  }
   0x6 LB: > { %s865_s6 = sadd.s32 4294967295, %s795_s29   ;;  %s613_s30 = sadd.s32 4294967294, %s795_s29   ;;  %s795_s29 = sphi %s850_s29, %s974_s29   ;;  %s791_s28 = sphi %s848_s28, %s973_s28   ;;  %s787_s27 = sphi %s846_s27, %s972_s27   ;;  %s783_s26 = sphi %s844_s26, %s971_s26  }
   0x7   : > { %s869_s8 = sadd.s32 1, %s795_s29   ;;  %s181_s9 = sadd.s32 1, %s791_s28 }
   0x8   : > { %s178_s10 = ssub.s32 %s795_s29, %s869_s8  ;;  %p191_p0 = scmp.ne.s32.totalorder %s791_s28, %s787_s27 }
   0x9   : > { %p179_p1 = scmp.eq.s32.totalorder %s178_s10, 0  ;;  %p192_p2 = scmp.eq.s32.totalorder %s865_s6, 1 }
   0xa   : > { %p197_p3 = scmp.ne.s32.totalorder %s787_s27, %s783_s26  ;;  %p198_p4 = scmp.eq.s32.totalorder %s613_s30, 1 }
   0xb   : > { %s880_s11 = scalar_select %p179_p1, %s791_s28, %s181_s9  }
   0xc   : > { %p882_p5 = por %p192_p2, %p191_p0  ;;  %p886_p6 = por %p198_p4, %p197_p3 }
   0xd   : > { %p616_p7 = scmp.ge.s32.totalorder %s795_s29, 1  ;;  %p243_p8 = scmp.lt.s32.totalorder %s795_s29, 3 }
   0xf   : > { %p244_p9 = pnand %p616_p7, %p243_p8 }
  0x10   : > { %s617_s16 = sshll.u32 (!%p244_p9), %s865_s6, 2 }
  0x11   : > { %247 = sbr.rel (%p244_p9) target bundleno = 683 (0x2ab), region = 48  ;;  %p275_p10 = scmp.lt.s32.totalorder (!%p244_p9), %s617_s16, 7 }
  0x16   : > { %v716_v1 = vld [vmem:[%s962_s1] sm:$0xff]   ;;  %s976_s16 = smov (!%p275_p10, %s617_s16), 7  ;;  %vm302_vm0 = vcmask 130048   ;;  %v717_v8 = vld [vmem:[%s964_s3 + $0x8] sm:$0xff]   ;;  %vm387_vm1 = vcmask 261120   ;;  %v797_v25 = vmov 0.0   ;;  %v454_v42 = vlaneseq }
  0x17   : > { %648 = vmatprep.subr.bf16.mxu1 %v716_v1  ;;  %s618_s17 = sshll.u32 %s976_s16, 3  ;;  %v718_v9 = vld [vmem:[%s964_s3] sm:$0xff]   ;;  %662 = vmatprep.subr.mxu0 %v797_v25  ;;  %vm798_vm2 = vmmov 0   ;;  %v799_v27 = vmov 0   ;;  %s272_s16 = sand.u32 1, %s787_s27   ;;  %vm543_vm3 = vcmask 253952  }
  0x18   : > { %649 = vmatpush3.bf16.msra.mxu1 %v716_v1  ;;  %s278_s20 = scalar_lea.vmem %s961_s0, %s618_s17  ;;  %v619_v11 = vld [vmem:[%s963_s2] ss:$0 sm:$0xff]  ;;  %670 = vmatprep.mubr.msk.f32.mxu0 %vm798_vm2, %v797_v25  ;;  %v455_v43 = vshrl.u32 %v454_v42, 7  ;;  %s633_s17 = sshll.u32 %s865_s6, 4 }
  0x19   : > { %v281_v2 = vld [vmem:[%s278_s20] sm:$0xff]  ;;  %v282_v3 = vld [vmem:[%s278_s20 + $0x8] sm:$0xff]  ;;  %v283_v4 = vld [vmem:[%s278_s20 + $0x10] sm:$0xff]  ;;  %654 = vmatprep.subr.bf16.mxu1 %v717_v8  ;;  %715 = vset.pattern.permute.xlu0 %v799_v27  ;;  %s273_s18 = scalar_lea.vmem [#allocation3], %s272_s16  ;;  %s926_s22 = scalar_lea.hbm %s968_s7, %s633_s17 }
  0x1a   : > { %v285_v5 = vpack.c.bf16 %v282_v3, %v281_v2  ;;  %v284_v6 = vld [vmem:[%s278_s20 + $0x18] sm:$0xff]  ;;  %v448_v26 = vld [vmem:[#allocation2] sm:$0x1]  ;;  %v456_v44 = vsub.s32 0, %v455_v43  ;;  %s558_s19 = sshll.u32 %s273_s18, 4  ;;  %s546_s23 = scalar_lea.sflag [#allocation4], %s272_s16  ;;  %s559_s19 = int_to_ptr.vmem [resolvable:$true] %s558_s19 }
  0x1b   : > { %v286_v7 = vpack.c.bf16 %v284_v6, %v283_v4  ;;  %451 = vperm.xlu0 %715, %v448_v26   ;;  %v623_v30 = vld [vmem:[%s965_s4] ss:$0 sm:$0xff]  ;;  %s735_s24 = scalar_lea.vmem %s559_s19, 16  ;;  %s800_s6 = smov [#allocation3]  }
  0x1c   : > { %650 = vmatprep.mubr.msk.bf16.mxu1 %vm302_vm0, %v285_v5  ;;  %v447_v41 = vld [vmem:[%s966_s5] sm:$0x1]  ;;  %p736_p11 = scmp.ne.s32.totalorder %s559_s19, %s735_s24  ;;  %s739_s25 = sshll.u32 %s800_s6, 4  ;;  %s740_s25 = int_to_ptr.vmem [resolvable:$false] %s739_s25 }
  0x1d   : > { %651 = vmatmul.mubr.msk.bf16.vlgmr.msra.gmra.mxu1 %vm302_vm0, %v286_v7  ;;  %s741_s30 = scalar_lea.vmem %s740_s25, 32  ;;  %p742_p0 = scmp.lt.s32.totalorder %s559_s19, %s740_s25 }
  0x1e   : > { %655 = vmatpush3.bf16.msra.mxu1 %v717_v8  ;;  %p737_p12 = pnand %p736_p11, %p882_p5  ;;  %p743_p1 = scmp.lt.s32.totalorder %s741_s30, %s735_s24 }
  0x1f   : > { %656 = vmatprep.subr.bf16.mxu1 %v718_v9 }
  0x20   : > { %p738_p13 = pneg %p737_p12  ;;  %p744_p2 = por %p743_p1, %p742_p0 }
  0x22   : > { %657 = vmatpush3.bf16.msra.mxu1 %v718_v9  ;;  %p745_p3 = pnand %p744_p2, %p738_p13 }
  0x96   : > { %v452_v45 = vpop.permute.xlu0 %451 }
  0x97   : > { %v457_v46 = vrot.slane %v452_v45, %v456_v44 }
  0xdd   : > { %v652_v10 = vpop.f32.mrf.mxu1 }
  0xde   : > { %v352_v16 = vadd.f32 %v652_v10, %v619_v11 }
  0xdf   : > { %v343_v12 = vpop.f32.mrf.mxu1 }
  0xe0   : > { %v344_v13 = vadd.f32 %v619_v11, %v343_v12 }
  0xe1   : > { %v653_v14 = vpop.f32.mrf.mxu1 }
  0xe2   : > { %v355_v15 = vadd.f32 %v653_v14, %v619_v11  ;;  %719 = vtanh.f32 %v344_v13 }
  0xe3   : > { %v346_v17 = vpop.f32.mrf.mxu1 }
  0xe4   : > { %v347_v18 = vadd.f32 %v619_v11, %v346_v17  ;;  %721 = vtanh.f32 %v355_v15 }
  0xe6   : > { %723 = vtanh.f32 %v347_v18 }
  0xe7   : > { %725 = vtanh.f32 %v352_v16 }
  0xef   : > { %v720_v19 = vpop.eup %719 }
  0xf1   : > { %v722_v20 = vpop.eup %721 }
  0xf3   : > { %v724_v21 = vpop.eup %723 }
  0xf4   : > { %v726_v22 = vpop.eup %725  ;;  %v362_v23 = vpack.c.bf16 %v724_v21, %v720_v19 }
  0xf5   : > { %v363_v24 = vpack.c.bf16 %v722_v20, %v726_v22 }
  0xf6   : > { %658 = vmatprep.mubr.msk.bf16.mxu1 %vm387_vm1, %v362_v23 }
  0xf7   : > { %659 = vmatmul.mubr.msk.bf16.vlgmr.msra.gmra.mxu1 %vm387_vm1, %v363_v24 }
 0x1b7   : > { %v660_v28 = vpop.f32.mrf.mxu1 }
 0x1b8   : > { %v437_v33 = vadd.f32 %v660_v28, %v623_v30 }
 0x1b9   : > { %v428_v29 = vpop.f32.mrf.mxu1 }
 0x1ba   : > { %v429_v36 = vadd.f32 %v623_v30, %v428_v29 }
 0x1bb   : > { %v661_v31 = vpop.f32.mrf.mxu1 }
 0x1bc   : > { %v440_v32 = vadd.f32 %v661_v31, %v623_v30 }
 0x1bd   : > { %v431_v34 = vpop.f32.mrf.mxu1 }
 0x1be   : > { %727 = vtanh.f32 %v440_v32  ;;  %v432_v35 = vadd.f32 %v623_v30, %v431_v34 }
 0x1bf   : > { %729 = vtanh.f32 %v437_v33 }
 0x1c0   : > { %731 = vtanh.f32 %v432_v35 }
 0x1c1   : > { %733 = vtanh.f32 %v429_v36 }
 0x1cb   : > { %v728_v37 = vpop.eup %727 }
 0x1cc   : > { %663 = vmatpush3.xpose.msk.msra.mxu0 %vm387_vm1, %v728_v37  ;;  %v730_v38 = vpop.eup %729 }
 0x1cd   : > { %664 = vmatprep.subr.mxu0 %v797_v25  ;;  %v732_v39 = vpop.eup %731 }
 0x1ce   : > { %v734_v40 = vpop.eup %733 }
 0x1d0   : > { %665 = vmatpush3.xpose.msk.msra.mxu0 %vm387_vm1, %v730_v38 }
 0x1d1   : > { %666 = vmatprep.subr.mxu0 %v797_v25 }
 0x1d4   : > { %667 = vmatpush3.xpose.msk.msra.mxu0 %vm387_vm1, %v732_v39 }
 0x1d5   : > { %668 = vmatprep.subr.mxu0 %v797_v25 }
 0x1d8   : > { %669 = vmatpush3.xpose.msk.msra.mxu0 %vm387_vm1, %v734_v40 }
 0x1db   : > { %671 = vmatmul.mubr.msk.f32.vlgmr.msra.gmra.mxu0 %vm387_vm1, %v447_v41 }
 0x29b   : > { %v539_v47 = vpop.f32.mrf.mxu0 }
 0x29c   : > { %v540_v48 = vadd.f32 %v539_v47, %v457_v46 }
 0x29d   : > { %v672_v49 = vpop.f32.mrf.mxu0 }
 0x29e   : > { %544 = vst.msk [vmem:[%s273_s18] sm:$0x1] %vm543_vm3, %v540_v48 }
 0x29f   : > { %748 = shalt.err (!%p745_p3)
}
 0x2a0   : > { %s749_s9 = scalar_lea.hbm %s926_s22, 16  ;;  %s753_s15 = scalar_lea.hbm %s968_s7, 32 }
 0x2a1   : > { %p750_p4 = scmp.ne.s32.totalorder %s926_s22, %s749_s9  ;;  %p754_p9 = scmp.lt.s32.totalorder %s926_s22, %s968_s7 }
 0x2a2   : > { %p755_p10 = scmp.lt.s32.totalorder %s753_s15, %s749_s9 }
 0x2a3   : > { %p751_p7 = pnand %p750_p4, %p882_p5 }
 0x2a4   : > { %p756_p11 = por %p755_p10, %p754_p9 }
 0x2a5   : > { %p752_p8 = pneg %p751_p7 }
 0x2a7   : > { %p757_p12 = pnand %p756_p11, %p752_p8 }
 0x2a9   : > { %760 = shalt.err (!%p757_p12)
}
 0x2aa   : > { %673 = dma.vmem_to_hbm [thread:$0]  (%p882_p5), %s559_s19, 16, %s926_s22, %s546_s23  }
 0x2ab PF: > { %p679_p13 = scmp.ge.s32.totalorder %s795_s29, 2  ;;  %s570_s18 = sand.u32 1, %s783_s26  }
 0x2ac   : > { %s571_s20 = scalar_lea.sflag [#allocation4], %s570_s18 }
 0x2ad   : > { %p676_p0 = pnand %p679_p13, %p886_p6 }
 0x2af   : > { %p677_p1 = pneg %p676_p0 }
 0x2b1   : > { %778 = dma.done.wait (%p677_p1), %s571_s20, 16  }
 0x2b2   : > { %780 = vsyncadd (%p677_p1), %s571_s20, 4294967280  ;;  %p19_p2 = scmp.ge.s32.totalorder %s869_s8, 4   ;;  %s971_s26 = smov %s787_s27 }
 0x2b3   : > { %s972_s27 = smov %s791_s28  ;;  %s973_s28 = smov %s880_s11 }
 0x2b4   : > { %s974_s29 = smov %s869_s8  ;;  %21 = sbr.rel (!%p19_p2) target bundleno = 6 (0x6), region = 83 }
 0x2b9   :  { %575 = vsyncpa [#allocation4], 1 }
 0x2ba   :  { %577 = vsyncpa [#allocation4 + $0x1], 1 }

</bundles_post_ra>
